<compile_context>
chip_gen: v7x
topology: tpu7x:2x2x1
jax: 0.10.0
libtpu: 0.0.40
codegen_flags: <defaults>
</compile_context>

<pallas_src>
import math

import numpy as np
import jax
import jax.numpy as jnp
from jax import lax
from jax.experimental import pallas as pl
from jax.experimental.pallas import tpu as pltpu

_INV_SQRT2 = 1.0 / math.sqrt(2.0)
_HALF_PI = 0.5 * math.pi


def _gelu(v):
    # Exact GELU (erf form), matching torch.nn.GELU() default.
    return 0.5 * v * (1.0 + lax.erf(v * _INV_SQRT2))


def _round_up(x, m):
    return ((x + m - 1) // m) * m


def _time_embedding_kernel(t_ref, freq_ref, shift_ref, w_ref, b_ref, o_ref):
    # Sinusoidal embedding, lane-dense, one EUP sin pass:
    #   lanes [0, D/2)  -> sin(t * f_k)
    #   lanes [D/2, D)  -> cos(t * f_k) = sin(t * f_k + pi/2)
    # freq/shift are grid-invariant (1, D) residents; the broadcast does the
    # (BM, D) expansion.
    phase = t_ref[...] * freq_ref[...] + shift_ref[...]          # (BM, D) f32
    emb = jnp.sin(phase)                                         # (BM, D) f32

    # Linear (bf16 MXU operands, f32 accumulation) + bias + GELU, fused.
    y = jnp.dot(emb.astype(w_ref.dtype), w_ref[...],
                preferred_element_type=jnp.float32) + b_ref[...]
    o_ref[...] = _gelu(y).astype(o_ref.dtype)


def time_embedding(t, w, b, *, theta=10000.0, block_b=None,
                   mxu_dtype=jnp.bfloat16):
    """t: (B,) timesteps; w: (time_dim, time_dim) laid out (in, out); b: (1, time_dim)."""
    B = t.shape[0]
    D = w.shape[0]
    half = D // 2

    if block_b is None:
        # Single grid step for small batches; cap at 256 rows so the in-register
        # (BM, D) intermediates stay comfortably within vreg budget.
        block_b = min(_round_up(B, 8), 256)
    block_b = _round_up(block_b, 8)
    nb = pl.cdiv(B, block_b)
    B_pad = nb * block_b

    t2 = t.reshape(B, 1).astype(jnp.float32)
    if B_pad != B:
        # TODO(synk): for ragged B, an in-kernel tail mask would avoid these two ops.
        t2 = jnp.pad(t2, ((0, B_pad - B), (0, 0)))

    # Grid-invariant lane constants, built host-side (no per-step recompute, no
    # extra XLA ops beyond the transfer): freq = theta**(-k/(half-1)) duplicated
    # over both halves, shift = 0 for sin lanes, pi/2 for cos lanes.
    k = np.arange(half, dtype=np.float32)
    freq_half = np.exp(k * (-math.log(theta) / (half - 1))).astype(np.float32)
    freq = jnp.asarray(np.concatenate([freq_half, freq_half]).reshape(1, D))
    shift = jnp.asarray(
        np.concatenate([np.zeros(half, np.float32),
                        np.full(half, _HALF_PI, np.float32)]).reshape(1, D))

    out = pl.pallas_call(
        _time_embedding_kernel,
        out_shape=jax.ShapeDtypeStruct((B_pad, D), jnp.float32),
        grid_spec=pltpu.PrefetchScalarGridSpec(
            num_scalar_prefetch=0,
            grid=(nb,),
            in_specs=[
                pl.BlockSpec((block_b, 1), lambda i: (i, 0)),   # per-block timesteps
                pl.BlockSpec((1, D), lambda i: (0, 0)),         # freq table (resident)
                pl.BlockSpec((1, D), lambda i: (0, 0)),         # phase shift (resident)
                pl.BlockSpec((D, D), lambda i: (0, 0)),         # weight (resident, bf16)
                pl.BlockSpec((1, D), lambda i: (0, 0)),         # bias (resident, f32)
            ],
            out_specs=pl.BlockSpec((block_b, D), lambda i: (i, 0)),
        ),
        compiler_params=pltpu.CompilerParams(dimension_semantics=("parallel",)),
    )(t2, freq, shift, w.astype(mxu_dtype), b.astype(jnp.float32))
    return out if B_pad == B else out[:B]


def reference(t, w, b, *, theta=10000.0):
    """Pure-JAX reference mirroring the PyTorch forward (f32, HIGHEST precision)."""
    D = w.shape[0]
    half = D // 2
    freqs = jnp.exp(jnp.arange(half, dtype=jnp.float32) * (-math.log(theta) / (half - 1)))
    emb = t.astype(jnp.float32)[:, None] * freqs[None, :]
    emb = jnp.concatenate([jnp.sin(emb), jnp.cos(emb)], axis=-1)
    y = jnp.dot(emb, w, precision=lax.Precision.HIGHEST) + b
    return _gelu(y)


if __name__ == "__main__":
    B, time_dim = 16, 128   # time_dim on the 128-lane axis -> lane-dense

    key = jax.random.PRNGKey(0)
    kt, kw, kb = jax.random.split(key, 3)

    # Diffusion timesteps.
    t = jax.random.uniform(kt, (B,), jnp.float32, 0.0, 1000.0)
    # torch nn.Linear weight is (out, in); kernel consumes it as (in, out).
    bound = 1.0 / math.sqrt(time_dim)
    w = jax.random.uniform(kw, (time_dim, time_dim), jnp.float32, -bound, bound)
    b = jax.random.uniform(kb, (1, time_dim), jnp.float32, -bound, bound)

    out = jax.block_until_ready(time_embedding(t, w, b))
    ref = jax.block_until_ready(reference(t, w, b))

    assert out.shape == (B, time_dim), out.shape
    # bf16 MXU operands with f32 accumulation over K=128 give ~1e-3 worst-case
    # deviation vs the f32 HIGHEST-precision reference; 5e-3 is a comfortable bound.
    err = float(jnp.max(jnp.abs(out - ref)))
    assert jnp.allclose(out, ref, atol=5e-3, rtol=5e-3), err
    print("KERNEL_OK")
</pallas_src>

<mosaic_0001>
module attributes {stable_mosaic.version = 11 : i64} {
  func.func @_time_embedding_kernel(%arg0: i32, %arg1: memref<16x1xf32, #tpu.memory_space<vmem>>, %arg2: memref<1x128xf32, #tpu.memory_space<vmem>>, %arg3: memref<1x128xf32, #tpu.memory_space<vmem>>, %arg4: memref<128x128xbf16, #tpu.memory_space<vmem>>, %arg5: memref<1x128xf32, #tpu.memory_space<vmem>>, %arg6: memref<16x128xf32, #tpu.memory_space<vmem>>) attributes {dimension_semantics = [#tpu.dimension_semantics<parallel>], iteration_bounds = array<i64: 1>, scalar_prefetch = 0 : i64, scratch_operands = 0 : i64, tpu.core_type = #tpu.core_type<tc>, window_params = [{transform_indices = @transform_0, window_bounds = array<i64: 16, 1>}, {pipeline_mode = #tpu.pipeline_mode<synchronous>, transform_indices = @transform_1, window_bounds = array<i64: 1, 128>}, {pipeline_mode = #tpu.pipeline_mode<synchronous>, transform_indices = @transform_2, window_bounds = array<i64: 1, 128>}, {pipeline_mode = #tpu.pipeline_mode<synchronous>, transform_indices = @transform_3, window_bounds = array<i64: 128, 128>}, {pipeline_mode = #tpu.pipeline_mode<synchronous>, transform_indices = @transform_4, window_bounds = array<i64: 1, 128>}, {transform_indices = @transform_5, window_bounds = array<i64: 16, 128>}]} {
    %c0 = arith.constant 0 : index
    %c0_0 = arith.constant 0 : index
    %0 = vector.load %arg1[%c0, %c0_0] : memref<16x1xf32, #tpu.memory_space<vmem>>, vector<16x1xf32>
    %c0_1 = arith.constant 0 : index
    %c0_2 = arith.constant 0 : index
    %1 = vector.load %arg2[%c0_1, %c0_2] : memref<1x128xf32, #tpu.memory_space<vmem>>, vector<1x128xf32>
    %2 = vector.broadcast %0 : vector<16x1xf32> to vector<16x128xf32>
    %3 = vector.broadcast %1 : vector<1x128xf32> to vector<16x128xf32>
    %4 = arith.mulf %2, %3 : vector<16x128xf32>
    %c0_3 = arith.constant 0 : index
    %c0_4 = arith.constant 0 : index
    %5 = vector.load %arg3[%c0_3, %c0_4] : memref<1x128xf32, #tpu.memory_space<vmem>>, vector<1x128xf32>
    %6 = vector.broadcast %5 : vector<1x128xf32> to vector<16x128xf32>
    %7 = arith.addf %4, %6 : vector<16x128xf32>
    %8 = math.sin %7 : vector<16x128xf32>
    %9 = arith.truncf %8 : vector<16x128xf32> to vector<16x128xbf16>
    %c0_5 = arith.constant 0 : index
    %c0_6 = arith.constant 0 : index
    %10 = vector.load %arg4[%c0_5, %c0_6] : memref<128x128xbf16, #tpu.memory_space<vmem>>, vector<128x128xbf16>
    %cst = arith.constant dense<0.000000e+00> : vector<16x128xf32>
    %11 = tpu.matmul %9, %10, %cst {dimension_numbers = #tpu.dot_dimension_numbers<[1], [0], [0], [1], [0, 0, 1, 1], [], []>} : vector<16x128xbf16>, vector<128x128xbf16>, vector<16x128xf32> -> vector<16x128xf32>
    %c0_7 = arith.constant 0 : index
    %c0_8 = arith.constant 0 : index
    %12 = vector.load %arg5[%c0_7, %c0_8] : memref<1x128xf32, #tpu.memory_space<vmem>>, vector<1x128xf32>
    %13 = vector.broadcast %12 : vector<1x128xf32> to vector<16x128xf32>
    %14 = arith.addf %11, %13 : vector<16x128xf32>
    %cst_9 = arith.constant 5.000000e-01 : f32
    %15 = vector.broadcast %cst_9 : f32 to vector<16x128xf32>
    %16 = arith.mulf %15, %14 : vector<16x128xf32>
    %cst_10 = arith.constant 0.707106769 : f32
    %17 = vector.broadcast %cst_10 : f32 to vector<16x128xf32>
    %18 = arith.mulf %14, %17 : vector<16x128xf32>
    %19 = math.erf %18 : vector<16x128xf32>
    %cst_11 = arith.constant 1.000000e+00 : f32
    %20 = vector.broadcast %cst_11 : f32 to vector<16x128xf32>
    %21 = arith.addf %20, %19 : vector<16x128xf32>
    %22 = arith.mulf %16, %21 : vector<16x128xf32>
    %c0_12 = arith.constant 0 : index
    %c0_13 = arith.constant 0 : index
    %23 = vector.load %arg6[%c0_12, %c0_13] : memref<16x128xf32, #tpu.memory_space<vmem>>, vector<16x128xf32>
    tpu.vector_store %arg6[%c0_12, %c0_13], %22 {strides = array<i32>} : memref<16x128xf32, #tpu.memory_space<vmem>>, vector<16x128xf32>,
    return
  }
  func.func @transform_0(%arg0: i32) -> (i32, i32) {
    %c0_i32 = arith.constant 0 : i32
    %c0_i32_0 = arith.constant 0 : i32
    return %arg0, %c0_i32 : i32, i32
  }
  func.func @transform_1(%arg0: i32) -> (i32, i32) {
    %c0_i32 = arith.constant 0 : i32
    %c0_i32_0 = arith.constant 0 : i32
    %c0_i32_1 = arith.constant 0 : i32
    return %c0_i32, %c0_i32_0 : i32, i32
  }
  func.func @transform_2(%arg0: i32) -> (i32, i32) {
    %c0_i32 = arith.constant 0 : i32
    %c0_i32_0 = arith.constant 0 : i32
    %c0_i32_1 = arith.constant 0 : i32
    return %c0_i32, %c0_i32_0 : i32, i32
  }
  func.func @transform_3(%arg0: i32) -> (i32, i32) {
    %c0_i32 = arith.constant 0 : i32
    %c0_i32_0 = arith.constant 0 : i32
    %c0_i32_1 = arith.constant 0 : i32
    return %c0_i32, %c0_i32_0 : i32, i32
  }
  func.func @transform_4(%arg0: i32) -> (i32, i32) {
    %c0_i32 = arith.constant 0 : i32
    %c0_i32_0 = arith.constant 0 : i32
    %c0_i32_1 = arith.constant 0 : i32
    return %c0_i32, %c0_i32_0 : i32, i32
  }
  func.func @transform_5(%arg0: i32) -> (i32, i32) {
    %c0_i32 = arith.constant 0 : i32
    %c0_i32_0 = arith.constant 0 : i32
    return %arg0, %c0_i32 : i32, i32
  }
}

</mosaic_0001>

<bundles_post_ra>
// kernel: tpu_custom_call.1
= control target key start
LH: loop header
LB: loop body
LE: loop exit
PB: predicated region body
PF: predicated region fallthrough
CT: control target
= control target key end

     0   :  { %10 = vsyncpa [#allocation3], 0  ;;  %s717_s0 = inlined_call_operand.vmem [shape: f32[16,1], index: 0, kind: input, shape index: {}]   ;;  %s718_s1 = inlined_call_operand.vmem [shape: f32[1,128], index: 1, kind: input, shape index: {}]   ;;  %s719_s2 = inlined_call_operand.vmem [shape: f32[1,128], index: 2, kind: input, shape index: {}]   ;;  %s720_s3 = inlined_call_operand.hbm [shape: bf16[128,128], index: 3, kind: input, shape index: {}]   ;;  %s721_s4 = inlined_call_operand.vmem [shape: f32[1,128], index: 4, kind: input, shape index: {}]   ;;  %s722_s5 = inlined_call_operand.hbm [shape: f32[16,128], index: 5, kind: output, shape index: {}]  }
   0x1   :  { %11 = vsyncpa [#allocation4], 0  ;;  %s556_s18 = smov [#allocation2]   ;;  %s508_s22 = scalar_lea.hbm %s720_s3, 1024 }
   0x2   :  { %s23_s19 = sshll.u32 %s556_s18, 4  ;;  %p509_p0 = scmp.ne.s32.totalorder %s720_s3, %s508_s22  ;;  %s24_s19 = int_to_ptr.vmem [resolvable:$true] %s23_s19 }
   0x3   :  { %p512_p1 = scmp.lt.u32.totalorder %s508_s22, %s720_s3 }
   0x5   :  { %p514_p2 = pnand %p512_p1, %p509_p0 }
   0x7   :  { %517 = shalt.err (!%p514_p2)
}
   0x8   :  { %s518_s27 = scalar_lea.vmem %s24_s19, 1024  ;;  %p523_p4 = scmp.lt.s32.totalorder %s24_s19, %s24_s19 }
   0x9   :  { %p519_p3 = scmp.ne.s32.totalorder %s24_s19, %s518_s27  ;;  %p524_p5 = scmp.lt.s32.totalorder %s518_s27, %s518_s27 }
   0xb   :  { %p525_p6 = por %p524_p5, %p523_p4 }
   0xd   :  { %p526_p7 = pnand %p525_p6, %p519_p3 }
   0xf   :  { %529 = shalt.err (!%p526_p7)
}
  0x10   :  { %s557_s28 = smov 64   ;;  %s558_s29 = smov 4  }
  0x11   :  { %29 = dma.hbm_to_vmem [thread:$0]  %s720_s3, 1024, %s24_s19, [#allocation3], %s557_s28, %s557_s28, %s558_s29  }
  0x12   :  { %552 = dma.done.wait [#allocation3], 1024  }
  0x13   :  { %553 = vsyncadd [#allocation3], 4294966272  ;;  %v559_v0 = vmov 0   ;;  %v36_v1 = vld [vmem:[%s717_s0] sm:$0xff]  ;;  %v37_v2 = vld [vmem:[%s717_s0 + $0x8] sm:$0xff]  ;;  %v560_v4 = vmov 0.0  }
  0x14   :  { %487 = vset.pattern.permute.xlu0 %v559_v0  ;;  %v488_v3 = vld [vmem:[#allocation2] sm:$0xff]   ;;  %444 = vmatprep.subr.bf16.mxu0 %v560_v4  ;;  %v489_v5 = vld [vmem:[#allocation2 + $0x8] sm:$0xff]   ;;  %v490_v6 = vld [vmem:[#allocation2 + $0x10] sm:$0xff]   ;;  %vm561_vm0 = vmmov 0   ;;  %v562_v36 = vmov 683565275  }
  0x15   :  { %41 = vperm.xlu0 %487, %v36_v1   ;;  %445 = vmatpush3.bf16.msra.mxu0 %v488_v3  ;;  %v491_v7 = vld [vmem:[#allocation2 + $0x18] sm:$0xff]   ;;  %v492_v8 = vld [vmem:[#allocation2 + $0x20] sm:$0xff]   ;;  %v493_v9 = vld [vmem:[#allocation2 + $0x28] sm:$0xff]   ;;  %v563_v40 = vmov 2475754826   ;;  %s568_s13 = smov [#allocation5]  }
  0x16   :  { %446 = vmatprep.subr.bf16.mxu0 %v560_v4  ;;  %460 = vmatprep.mubr.msk.bf16.mxu0 %vm561_vm0, %v560_v4  ;;  %v494_v10 = vld [vmem:[#allocation2 + $0x30] sm:$0xff]   ;;  %v495_v11 = vld [vmem:[#allocation2 + $0x38] sm:$0xff]   ;;  %v416_v12 = vld [vmem:[%s718_s1] ss:$0 sm:$0xff]  ;;  %v564_v42 = vmov 2131351028  }
  0x17   :  { %v417_v13 = vld [vmem:[%s719_s2] ss:$0 sm:$0xff]  ;;  %v565_v44 = vmov 2102212464   ;;  %v566_v46 = vmov 920167782  }
  0x18   :  { %v567_v53 = vmov 1326507024   ;;  %s404_s14 = sshll.u32 %s568_s13, 4  ;;  %s405_s14 = int_to_ptr.vmem [resolvable:$true] %s404_s14 }
  0x19   :  { %46 = vperm.xlu0 %487, %v37_v2   ;;  %447 = vmatpush3.bf16.msra.mxu0 %v489_v5  ;;  %p535_p9 = scmp.lt.s32.totalorder %s405_s14, %s405_s14 }
  0x1a   :  { %448 = vmatprep.subr.bf16.mxu0 %v560_v4 }
  0x1d   :  { %449 = vmatpush3.bf16.msra.mxu0 %v490_v6 }
  0x1e   :  { %450 = vmatprep.subr.bf16.mxu0 %v560_v4 }
  0x21   :  { %451 = vmatpush3.bf16.msra.mxu0 %v491_v7 }
  0x22   :  { %452 = vmatprep.subr.bf16.mxu0 %v560_v4 }
  0x25   :  { %453 = vmatpush3.bf16.msra.mxu0 %v492_v8 }
  0x26   :  { %454 = vmatprep.subr.bf16.mxu0 %v560_v4 }
  0x29   :  { %455 = vmatpush3.bf16.msra.mxu0 %v493_v9 }
  0x2a   :  { %456 = vmatprep.subr.bf16.mxu0 %v560_v4 }
  0x2d   :  { %457 = vmatpush3.bf16.msra.mxu0 %v494_v10 }
  0x2e   :  { %458 = vmatprep.subr.bf16.mxu0 %v560_v4 }
  0x31   :  { %459 = vmatpush3.bf16.msra.mxu0 %v495_v11 }
  0x94   :  { %v42_v14 = vpop.permute.xlu0 %41 }
  0x95   :  { %v55_v15 = vmul.f32 %v416_v12, %v42_v14 }
  0x97   :  { %v625_v16 = vadd.f32 %v417_v13, %v55_v15 }
  0x98   :  { %v47_v17 = vpop.permute.xlu0 %46 }
  0x99   :  { %v66_v18 = vand.u32 2147483647, %v625_v16  ;;  %v69_v19 = vand.u32 2139095040, %v625_v16  ;;  %v56_v20 = vmul.f32 %v416_v12, %v47_v17  ;;  %vm68_vm15 = vcmp.lt.s32.totalorder %v625_v16, 0 }
  0x9b   :  { %v70_v21 = vshrl.u32 %v69_v19, 23  ;;  %v629_v22 = vadd.f32 %v417_v13, %v56_v20  ;;  %v73_v23 = vand.u32 8388607, %v66_v18  ;;  %vm683_vm0 = vcmp.le.f32.partialorder %v66_v18, 0.7853982 }
  0x9d   :  { %v418_v24 = vadd.s32 4294967169, %v70_v21  ;;  %v173_v25 = vand.u32 2139095040, %v629_v22  ;;  %v74_v27 = vor.u32 8388608, %v73_v23  ;;  %v170_v29 = vand.u32 2147483647, %v629_v22 }
  0x9f   :  { %v76_v26 = vadd.s32 1, %v418_v24  ;;  %v174_v28 = vshrl.u32 %v173_v25, 23  ;;  %v635_v34 = vshll.u32 %v74_v27, 8  ;;  %v177_v38 = vand.u32 8388607, %v170_v29 }
  0xa1   :  { %vm77_vm1 = vcmp.gt.s32.totalorder %v76_v26, 0  ;;  %v422_v31 = vadd.s32 4294967169, %v174_v28  ;;  %v178_v4 = vor.u32 8388608, %v177_v38 }
  0xa2   :  { %v78_v30 = vsel %vm77_vm1, %v76_v26, 0  ;;  %vm172_vm1 = vcmp.lt.s32.totalorder %v629_v22, 0 }
  0xa3   :  { %v79_v32 = vshrl.u32 %v78_v30, 5  ;;  %v80_v33 = vand.u32 31, %v78_v30  ;;  %v180_v39 = vadd.s32 1, %v422_v31  ;;  %v218_v19 = vshll.u32 %v178_v4, 8 }
  0xa5   :  { %v81_v35 = vsub.s32 32, %v80_v33  ;;  %v83_v37 = vshll.u32 %v562_v36, %v80_v33  ;;  %v86_v41 = vshll.u32 %v563_v40, %v80_v33  ;;  %v89_v43 = vshll.u32 %v564_v42, %v80_v33 }
  0xa6   :  { %v92_v45 = vshll.u32 %v565_v44, %v80_v33  ;;  %v95_v47 = vshll.u32 %v566_v46, %v80_v33  ;;  %vm98_vm2 = vcmp.lt.s32.totalorder %v79_v32, 1  ;;  %vm100_vm3 = vcmp.lt.s32.totalorder %v79_v32, 3 }
  0xa7   :  { %v84_v48 = vshrl.u32 %v563_v40, %v81_v35  ;;  %v87_v49 = vshrl.u32 %v564_v42, %v81_v35  ;;  %v90_v50 = vshrl.u32 %v565_v44, %v81_v35  ;;  %v82_v51 = vshrl.u32 %v562_v36, %v81_v35 }
  0xa8   :  { %v93_v52 = vshrl.u32 %v566_v46, %v81_v35  ;;  %v96_v54 = vshrl.u32 %v567_v53, %v81_v35  ;;  %vm181_vm4 = vcmp.gt.s32.totalorder %v180_v39, 0  ;;  %vm101_vm5 = vcmp.lt.s32.totalorder %v79_v32, 4 }
  0xa9   :  { %v85_v55 = vor.u32 %v84_v48, %v83_v37  ;;  %v88_v56 = vor.u32 %v87_v49, %v86_v41  ;;  %v91_v57 = vor.u32 %v90_v50, %v89_v43  ;;  %v182_v60 = vsel %vm181_vm4, %v180_v39, 0 }
  0xaa   :  { %v94_v58 = vor.u32 %v93_v52, %v92_v45  ;;  %v97_v59 = vor.u32 %v96_v54, %v95_v47  ;;  %vm99_vm6 = vcmp.lt.s32.totalorder %v79_v32, 2  ;;  %v184_v7 = vand.u32 31, %v182_v60 }
  0xab   :  { %v102_v61 = vsel %vm98_vm2, %v82_v51, %v85_v55  ;;  %v103_v62 = vsel %vm101_vm5, %v91_v57, 2102212464  ;;  %v106_v63 = vsel %vm98_vm2, %v85_v55, %v88_v56  ;;  %v110_v0 = vsel %vm98_vm2, %v88_v56, %v91_v57 }
  0xac   :  { %v104_v1 = vsel %vm100_vm3, %v88_v56, %v103_v62  ;;  %v107_v2 = vsel %vm101_vm5, %v94_v58, 920167782  ;;  %v111_v3 = vsel %vm101_vm5, %v97_v59, 1326507024  ;;  %v183_v15 = vshrl.u32 %v182_v60, 5 }
  0xad   :  { %v108_v5 = vsel %vm100_vm3, %v91_v57, %v107_v2  ;;  %v112_v6 = vsel %vm100_vm3, %v94_v58, %v111_v3  ;;  %v105_v8 = vsel %vm99_vm6, %v102_v61, %v104_v1  ;;  %v185_v17 = vsub.s32 32, %v184_v7 }
  0xae   :  { %v109_v9 = vsel %vm99_vm6, %v106_v63, %v108_v5  ;;  %v113_v10 = vsel %vm99_vm6, %v110_v0, %v112_v6  ;;  %v121_v20 = vmul.u32 %v635_v34, %v105_v8  ;;  %v187_v21 = vshll.u32 %v562_v36, %v184_v7 }
  0xaf   :  { %v648_v11 = vmul.u32.u64.low %v635_v34, %v113_v10  ;;  %v649_v12 = vmul.u32.u64.high %v635_v34, %v113_v10, %v648_v11  ;;  %v652_v13 = vmul.u32.u64.low %v635_v34, %v109_v9  ;;  %v653_v14 = vmul.u32.u64.high %v635_v34, %v109_v9, %v652_v13 }
  0xb0   :  { %v190_v23 = vshll.u32 %v563_v40, %v184_v7  ;;  %v193_v24 = vshll.u32 %v564_v42, %v184_v7  ;;  %v188_v25 = vshrl.u32 %v563_v40, %v185_v17  ;;  %v191_v26 = vshrl.u32 %v564_v42, %v185_v17 }
  0xb1   :  { %v194_v27 = vshrl.u32 %v565_v44, %v185_v17  ;;  %v196_v28 = vshll.u32 %v565_v44, %v184_v7  ;;  %vm123_vm7 = vc.u32 %v649_v12, %v652_v13  ;;  %v124_v30 = vadd.s32 1, %v653_v14 }
  0xb2   :  { %v197_v31 = vshrl.u32 %v566_v46, %v185_v17  ;;  %v199_v32 = vshll.u32 %v566_v46, %v184_v7  ;;  %v189_v33 = vor.u32 %v188_v25, %v187_v21  ;;  %v192_v35 = vor.u32 %v191_v26, %v190_v23 }
  0xb3   :  { %v195_v37 = vor.u32 %v194_v27, %v193_v24  ;;  %v200_v38 = vshrl.u32 %v567_v53, %v185_v17  ;;  %v125_v34 = vsel %vm123_vm7, %v124_v30, %v653_v14  ;;  %vm202_vm8 = vcmp.lt.s32.totalorder %v183_v15, 1 }
  0xb4   :  { %v198_v39 = vor.u32 %v197_v31, %v196_v28  ;;  %vm205_vm9 = vcmp.lt.s32.totalorder %v183_v15, 4  ;;  %v126_v40 = vadd.s32 %v125_v34, %v121_v20  ;;  %vm204_vm10 = vcmp.lt.s32.totalorder %v183_v15, 3 }
  0xb5   :  { %v201_v41 = vor.u32 %v200_v38, %v199_v32  ;;  %v207_v42 = vsel %vm205_vm9, %v195_v37, 2102212464  ;;  %v186_v43 = vshrl.u32 %v562_v36, %v185_v17  ;;  %v210_v44 = vsel %vm202_vm8, %v189_v33, %v192_v35 }
  0xb6   :  { %v211_v45 = vsel %vm205_vm9, %v198_v39, 920167782  ;;  %v214_v47 = vsel %vm202_vm8, %v192_v35, %v195_v37  ;;  %v127_v48 = vadd.s32 536870912, %v126_v40  ;;  %vm203_vm11 = vcmp.lt.s32.totalorder %v183_v15, 2 }
  0xb7   :  { %v212_v46 = vsel %vm204_vm10, %v195_v37, %v211_v45  ;;  %v215_v49 = vsel %vm205_vm9, %v201_v41, 1326507024  ;;  %v206_v50 = vsel %vm202_vm8, %v186_v43, %v189_v33  ;;  %v208_v51 = vsel %vm204_vm10, %v192_v35, %v207_v42 }
  0xb8   :  { %v213_v52 = vsel %vm203_vm11, %v210_v44, %v212_v46  ;;  %v216_v53 = vsel %vm204_vm10, %v198_v39, %v215_v49  ;;  %v663_v54 = vshrl.u32 %v127_v48, 30  ;;  %v209_v60 = vsel %vm203_vm11, %v206_v50, %v208_v51 }
  0xb9   :  { %v217_v55 = vsel %vm203_vm11, %v214_v47, %v216_v53  ;;  %v665_v56 = vmul.u32.u64.low %v218_v19, %v213_v52  ;;  %v666_v57 = vmul.u32.u64.high %v218_v19, %v213_v52, %v665_v56  ;;  %v225_v63 = vmul.u32 %v218_v19, %v209_v60 }
  0xba   :  { %v668_v58 = vmul.u32.u64.low %v218_v19, %v217_v55  ;;  %v669_v59 = vmul.u32.u64.high %v218_v19, %v217_v55, %v668_v58  ;;  %v129_v36 = vshll.u32 %v663_v54, 30  ;;  %v122_v11 = vadd.s32 %v652_v13, %v649_v12 }
  0xbb   :  { %v228_v62 = vadd.s32 1, %v666_v57  ;;  %v152_v47 = vsub.s32 4, %v663_v54  ;;  %vm171_vm2 = vcmp.le.f32.partialorder %v170_v29, 0.7853982  ;;  %vm158_vm9 = vweird.f32 %v625_v16 }
  0xbc   :  { %v130_v61 = vsub.s32 %v126_v40, %v129_v36  ;;  %vm227_vm12 = vc.u32 %v669_v59, %v665_v56  ;;  %v226_v35 = vadd.s32 %v665_v56, %v669_v59  ;;  %vm262_vm10 = vweird.f32 %v629_v22 }
  0xbd   :  { %v229_v1 = vsel %vm227_vm12, %v228_v62, %v666_v57  ;;  %v153_v18 = vsel %vm68_vm15, %v152_v47, %v663_v54 }
  0xbe   :  { %v132_v0 = vsub.s32 0, %v130_v61  ;;  %v230_v2 = vadd.s32 %v229_v1, %v225_v63  ;;  %v155_v53 = vsel %vm683_vm0, 0, %v153_v18 }
  0xbf   :  { %v159_v57 = vadd.s32 3, %v155_v53 }
  0xc0   :  { %v419_v3 = vmin.u32 %v132_v0, %v130_v61  ;;  %v231_v4 = vadd.s32 536870912, %v230_v2 }
  0xc1   :  { %v160_v60 = vand.u32 3, %v159_v57 }
  0xc2   :  { %v134_v5 = vclz %v419_v3  ;;  %v232_v6 = vshrl.u32 %v231_v4, 30 }
  0xc3   :  { %vm162_vm3 = vcmp.eq.s32.totalorder %v160_v60, 0  ;;  %vm165_vm4 = vcmp.eq.s32.totalorder %v160_v60, 2  ;;  %vm161_vm5 = vcmp.lt.s32.totalorder %v160_v60, 2 }
  0xc4   :  { %v420_v7 = vadd.s32 4294967294, %v134_v5  ;;  %v233_v8 = vshll.u32 %v232_v6, 30  ;;  %v256_v50 = vsub.s32 4, %v232_v6 }
  0xc6   :  { %vm421_vm13 = vcmp.lt.s32.totalorder %v420_v7, 0  ;;  %v234_v10 = vsub.s32 %v230_v2, %v233_v8  ;;  %v257_v55 = vsel %vm172_vm1, %v256_v50, %v232_v6 }
  0xc7   :  { %v137_v9 = vsel %vm421_vm13, 0, %v420_v7  ;;  %v259_v58 = vsel %vm171_vm2, 0, %v257_v55 }
  0xc8   :  { %v138_v14 = vsub.s32 32, %v137_v9  ;;  %v142_v15 = vsub.s32 4294967266, %v137_v9  ;;  %v236_v17 = vsub.s32 0, %v234_v10  ;;  %v139_v19 = vshll.u32 %v130_v61, %v137_v9 }
  0xc9   :  { %v263_v54 = vadd.s32 3, %v259_v58 }
  0xca   :  { %v140_v20 = vshrl.u32 %v122_v11, %v138_v14  ;;  %v143_v21 = vadd.s32 127, %v142_v15  ;;  %v423_v23 = vmin.u32 %v236_v17, %v234_v10  ;;  %v426_v14 = vld [vmem:[%s721_s4] ss:$0 sm:$0xff]  ;;  %s530_s4 = scalar_lea.vmem %s405_s14, 256 }
  0xcb   :  { %v264_v63 = vand.u32 3, %v263_v54  ;;  %p531_p8 = scmp.ne.s32.totalorder %s405_s14, %s530_s4  ;;  %p536_p10 = scmp.lt.s32.totalorder %s530_s4, %s530_s4 }
  0xcc   :  { %v141_v24 = vor.u32 %v140_v20, %v139_v19  ;;  %v144_v25 = vshll.u32 %v143_v21, 23  ;;  %v238_v26 = vclz %v423_v23 }
  0xcd   :  { %vm269_vm6 = vcmp.eq.s32.totalorder %v264_v63, 2  ;;  %vm266_vm7 = vcmp.eq.s32.totalorder %v264_v63, 0  ;;  %vm265_vm8 = vcmp.lt.s32.totalorder %v264_v63, 2  ;;  %p537_p11 = por %p536_p10, %p535_p9 }
  0xce   :  { %v145_v27 = vor.u32 4788187, %v144_v25  ;;  %v424_v28 = vadd.s32 4294967294, %v238_v26  ;;  %v148_v31 = vcvt.s32.f32 %v141_v24 }
  0xcf   :  { %p538_p12 = pnand %p537_p11, %p531_p8 }
  0xd0   :  { %v146_v30 = vand.u32 2147483647, %v145_v27  ;;  %vm425_vm14 = vcmp.lt.s32.totalorder %v424_v28, 0 }
  0xd1   :  { %v241_v33 = vsel %vm425_vm14, 0, %v424_v28 }
  0xd2   :  { %v149_v32 = vmul.f32 %v148_v31, %v146_v30  ;;  %v242_v12 = vsub.s32 32, %v241_v33  ;;  %v246_v13 = vsub.s32 4294967266, %v241_v33  ;;  %v243_v38 = vshll.u32 %v234_v10, %v241_v33 }
  0xd4   :  { %v150_v37 = vxor.u32 2147483648, %v149_v32  ;;  %v244_v34 = vshrl.u32 %v226_v35, %v242_v12  ;;  %v247_v39 = vadd.s32 127, %v246_v13 }
  0xd6   :  { %v151_v40 = vsel %vm68_vm15, %v150_v37, %v149_v32  ;;  %v245_v41 = vor.u32 %v244_v34, %v243_v38  ;;  %v248_v42 = vshll.u32 %v247_v39, 23 }
  0xd7   :  { %v154_v44 = vsel %vm683_vm0, %v625_v16, %v151_v40 }
  0xd8   :  { %v249_v45 = vor.u32 4788187, %v248_v42  ;;  %v252_v46 = vcvt.s32.f32 %v245_v41  ;;  %496 = vcosq.f32 %v154_v44 }
  0xd9   :  { %498 = vsinq.f32 %v154_v44 }
  0xda   :  { %v250_v48 = vand.u32 2147483647, %v249_v45 }
  0xdc   :  { %v253_v49 = vmul.f32 %v252_v46, %v250_v48 }
  0xde   :  { %v254_v51 = vxor.u32 2147483648, %v253_v49 }
  0xe0   :  { %v255_v52 = vsel %vm172_vm1, %v254_v51, %v253_v49 }
  0xe1   :  { %v258_v56 = vsel %vm171_vm2, %v629_v22, %v255_v52 }
  0xe2   :  { %500 = vcosq.f32 %v258_v56  ;;  %v497_v59 = vpop.eup %496 }
  0xe3   :  { %502 = vsinq.f32 %v258_v56  ;;  %v499_v36 = vpop.eup %498  ;;  %v166_v62 = vxor.u32 2147483648, %v497_v59 }
  0xe4   :  { %v163_v61 = vxor.u32 2147483648, %v499_v36 }
  0xe5   :  { %v167_v2 = vsel %vm165_vm4, %v166_v62, %v499_v36 }
  0xe6   :  { %v164_v1 = vsel %vm162_vm3, %v497_v59, %v163_v61 }
  0xe7   :  { %v168_v5 = vsel %vm161_vm5, %v164_v1, %v167_v2 }
  0xe8   :  { %v169_v9 = vsel %vm158_vm9, nan, %v168_v5 }
  0xec   :  { %v501_v0 = vpop.eup %500 }
  0xed   :  { %v503_v29 = vpop.eup %502  ;;  %v270_v3 = vxor.u32 2147483648, %v501_v0 }
  0xee   :  { %v267_v4 = vxor.u32 2147483648, %v503_v29 }
  0xef   :  { %v271_v6 = vsel %vm269_vm6, %v270_v3, %v503_v29 }
  0xf0   :  { %v268_v7 = vsel %vm266_vm7, %v501_v0, %v267_v4 }
  0xf1   :  { %v272_v8 = vsel %vm265_vm8, %v268_v7, %v271_v6 }
  0xf2   :  { %v273_v10 = vsel %vm262_vm10, nan, %v272_v8 }
  0xf3   :  { %v274_v11 = vpack.c.bf16 %v273_v10, %v169_v9 }
  0xf5   :  { %461 = vmatmul.mubr.bf16.vlgmr.msra.gmra.mrb[0].mxu0 %v274_v11 }
 0x1c8   :  { %v380_v15 = vpop.f32.mrb[0].mxu0 }
 0x1c9   :  { %v381_v17 = vadd.f32 %v426_v14, %v380_v15  ;;  %v462_v19 = vpop.f32.mrb[1].mxu0 }
 0x1ca   :  { %v383_v20 = vpop.f32.mrb[2].mxu0 }
 0x1cb   :  { %v389_v21 = vmul.f32 0.70710677, %v381_v17  ;;  %v384_v23 = vadd.f32 %v426_v14, %v383_v20  ;;  %v463_v24 = vpop.f32.mrb[3].mxu0  ;;  %v387_v25 = vmul.f32 0.5, %v381_v17 }
 0x1cd   :  { %504 = verf.f32 %v389_v21  ;;  %v390_v16 = vmul.f32 0.70710677, %v384_v23  ;;  %v388_v30 = vmul.f32 0.5, %v384_v23 }
 0x1cf   :  { %506 = verf.f32 %v390_v16 }
 0x1d7   :  { %v505_v22 = vpop.eup %504 }
 0x1d8   :  { %v393_v26 = vadd.f32 1.0, %v505_v22 }
 0x1d9   :  { %v507_v27 = vpop.eup %506 }
 0x1da   :  { %v395_v28 = vmul.f32 %v393_v26, %v387_v25  ;;  %v394_v31 = vadd.f32 1.0, %v507_v27 }
 0x1dc   :  { %397 = vst [vmem:[#allocation5] sm:$0xff] %v395_v28  ;;  %v396_v32 = vmul.f32 %v394_v31, %v388_v30 }
 0x1de   :  { %398 = vst [vmem:[#allocation5 + $0x8] sm:$0xff] %v396_v32 }
 0x1df   :  { %541 = shalt.err (!%p538_p12)
}
 0x1e0   :  { %s542_s17 = scalar_lea.hbm %s722_s5, 256 }
 0x1e1   :  { %p543_p13 = scmp.ne.s32.totalorder %s722_s5, %s542_s17  ;;  %p546_p0 = scmp.lt.u32.totalorder %s542_s17, %s722_s5 }
 0x1e3   :  { %p548_p1 = pnand %p546_p0, %p543_p13 }
 0x1e5   :  { %551 = shalt.err (!%p548_p1)
}
 0x1e6   :  { %s569_s22 = smov 128   ;;  %s570_s23 = smov 8  }
 0x1e7   :  { %410 = dma.vmem_to_hbm [thread:$0]  %s405_s14, 256, %s722_s5, [#allocation4], %s569_s22, %s569_s22, %s570_s23  }
 0x1e8   :  { %554 = dma.done.wait [#allocation4], 256  }
 0x1e9   :  { %555 = vsyncadd [#allocation4], 4294967040 }
 0x1ea   :  { %414 = vsyncpa [#allocation3], 1 }
 0x1eb   :  { %415 = vsyncpa [#allocation4], 1 }

</bundles_post_ra>
